<compile_context>
chip_gen: v5e
topology: v5e:2x2
jax: 0.10.0
libtpu: 0.0.40
codegen_flags: <defaults>
</compile_context>

<pallas_src>
import functools
import math

import jax
import jax.numpy as jnp
from jax.experimental import pallas as pl
from jax.experimental.pallas import tpu as pltpu


def _layernorm_kernel(x_ref, g_ref, b_ref, o_ref, *, epsilon):
    # x_ref: (tile_rows, F); g_ref/b_ref: (1, F)
    x = x_ref[...].astype(jnp.float32)
    f = x.shape[-1]
    inv_f = jnp.float32(1.0 / f)

    # One-pass statistics: both lane reductions are independent (XLU pipelines).
    s1 = jnp.sum(x, axis=-1, keepdims=True)
    s2 = jnp.sum(x * x, axis=-1, keepdims=True)
    mean = s1 * inv_f
    # torch.std default is the UNBIASED estimator (divide by F-1).
    # NOTE: F == 1 yields NaN, exactly like torch.std(unbiased=True) on 1 elem.
    var = (s2 - s1 * mean) / jnp.float32(f - 1)
    var = jnp.maximum(var, jnp.float32(0.0))  # guard tiny negative rounding
    std = jnp.sqrt(var)

    # eps is added to std (module spec), NOT inside the sqrt (unlike nn.LayerNorm).
    d = std + jnp.float32(epsilon)
    # EUP approximate reciprocal seed + one Newton-Raphson step: avoids the VALU
    # divide sequence while staying numerically tight.
    inv = pl.reciprocal(d, approx=True)
    inv = inv * (jnp.float32(2.0) - d * inv)

    gain = g_ref[...].astype(jnp.float32)
    bias = b_ref[...].astype(jnp.float32)
    y = (x - mean) * inv * gain + bias
    o_ref[...] = y.astype(o_ref.dtype)


def _sublane_pack(dtype) -> int:
    # 8 for 4-byte types, 16 for 2-byte, 32 for 1-byte.
    itemsize = jnp.dtype(dtype).itemsize
    return 8 * max(1, 4 // itemsize)


def _vmem_capacity_bytes() -> int:
    try:
        return int(pltpu.get_tpu_info().vmem_capacity_bytes)
    except Exception:
        # Conservative default (v7x has only 64 MiB per TC).
        return 64 * 1024 * 1024


def layer_normalization(x, gain, bias, epsilon=1e-6):
    """LayerNormalization forward; normalizes over the last axis of x."""
    orig_shape = x.shape
    features = orig_shape[-1]
    rows = math.prod(orig_shape[:-1]) if len(orig_shape) > 1 else 1

    x2 = x.reshape(rows, features)
    g2 = gain.reshape(1, features)
    b2 = bias.reshape(1, features)

    itemsize = jnp.dtype(x.dtype).itemsize
    pack = _sublane_pack(x.dtype)

    # --- VMEM-budgeted row tile ------------------------------------------------
    vmem_bytes = _vmem_capacity_bytes()
    budget = (vmem_bytes * 3) // 5          # ~60%: headroom for gain/bias & regs
    # Double-buffered input tile + double-buffered output tile.
    per_row_bytes = 4 * features * itemsize
    tr_vmem = max(pack, budget // per_row_bytes)
    # TODO(synk): for extreme feature dims (tr_vmem*F*4*itemsize > VMEM, e.g.
    # F ~ 1M f32) a feature-tiled two-pass / Welford variant is needed; the
    # feature axis is never tiled here.

    MAX_TILE_ROWS = 1024                    # throughput saturates; keeps >=2 grid
                                            # steps on big inputs for v7x megacore
    if rows <= min(tr_vmem, MAX_TILE_ROWS):
        tr = rows                           # single full-extent block (layout-legal)
    else:
        tr = min(tr_vmem, MAX_TILE_ROWS)
        tr = max(pack, (tr // pack) * pack)  # sublane-pack aligned (8/16/32)
    grid = (pl.cdiv(rows, tr),)             # ragged last block is fine: per-row
                                            # stats, clipped stores

    # Raise the scoped VMEM limit (v5e default is 16 MiB) but stay well inside
    # physical VMEM on every generation (48 MiB on v7x, <=100 MiB on v5e/v6e).
    vmem_limit = int(min((vmem_bytes * 3) // 4, 100 * 1024 * 1024))

    # NOTE: F < 128 (as in the toy test, F=32) under-fills vreg lanes; accepted
    # for toy shapes — for F >= 128 the output is lane-dense as-is.

    kernel = functools.partial(_layernorm_kernel, epsilon=epsilon)

    out2 = pl.pallas_call(
        kernel,
        out_shape=jax.ShapeDtypeStruct((rows, features), x.dtype),
        grid_spec=pltpu.PrefetchScalarGridSpec(
            num_scalar_prefetch=0,
            grid=grid,
            in_specs=[
                pl.BlockSpec((tr, features), lambda i: (i, 0)),
                pl.BlockSpec((1, features), lambda i: (0, 0)),
                pl.BlockSpec((1, features), lambda i: (0, 0)),
            ],
            out_specs=pl.BlockSpec((tr, features), lambda i: (i, 0)),
        ),
        compiler_params=pltpu.CompilerParams(
            dimension_semantics=("parallel",),
            vmem_limit_bytes=vmem_limit,
        ),
    )(x2, g2, b2)

    return out2.reshape(orig_shape)


if __name__ == "__main__":
    key = jax.random.PRNGKey(0)
    batch, seq, hidden = 2, 8, 32   # features_count = hidden

    x = jax.random.normal(key, (batch, seq, hidden), dtype=jnp.float32)

    # nn.Parameter(torch.ones/zeros(features_count))
    gain = jnp.ones((hidden,), dtype=jnp.float32)
    bias = jnp.zeros((hidden,), dtype=jnp.float32)

    out = layer_normalization(x, gain, bias, epsilon=1e-6)
    out = jax.block_until_ready(out)

    # Pure-JAX reference (unbiased std + eps added to std, matching the module).
    mean = jnp.mean(x, axis=-1, keepdims=True)
    std = jnp.sqrt(jnp.sum((x - mean) ** 2, axis=-1, keepdims=True) / (hidden - 1))
    ref = gain * (x - mean) / (std + 1e-6) + bias

    # 1e-4 tolerance: covers the Newton-refined approx reciprocal / one-pass
    # variance rounding, yet still catches a biased-vs-unbiased std error
    # (~1.6% at F=32).
    assert jnp.allclose(out, ref, atol=1e-4, rtol=1e-4), "mismatch vs reference"

    print("KERNEL_OK")
</pallas_src>

<mosaic_0001>
module attributes {stable_mosaic.version = 11 : i64} {
  func.func @_layernorm_kernel(%arg0: i32, %arg1: memref<16x32xf32, #tpu.memory_space<vmem>>, %arg2: memref<1x32xf32, #tpu.memory_space<vmem>>, %arg3: memref<1x32xf32, #tpu.memory_space<vmem>>, %arg4: memref<16x32xf32, #tpu.memory_space<vmem>>) attributes {dimension_semantics = [#tpu.dimension_semantics<parallel>], iteration_bounds = array<i64: 1>, scalar_prefetch = 0 : i64, scratch_operands = 0 : i64, tpu.core_type = #tpu.core_type<tc>, window_params = [{transform_indices = @transform_0, window_bounds = array<i64: 16, 32>}, {pipeline_mode = #tpu.pipeline_mode<synchronous>, transform_indices = @transform_1, window_bounds = array<i64: 1, 32>}, {pipeline_mode = #tpu.pipeline_mode<synchronous>, transform_indices = @transform_2, window_bounds = array<i64: 1, 32>}, {transform_indices = @transform_3, window_bounds = array<i64: 16, 32>}]} {
    %c0 = arith.constant 0 : index
    %c0_0 = arith.constant 0 : index
    %0 = vector.load %arg1[%c0, %c0_0] : memref<16x32xf32, #tpu.memory_space<vmem>>, vector<16x32xf32>
    %cst = arith.constant dense<0.000000e+00> : vector<16xf32>
    %1 = vector.multi_reduction <add>, %0, %cst [1] : vector<16x32xf32> to vector<16xf32>
    %2 = vector.shape_cast %1 : vector<16xf32> to vector<16x1xf32>
    %3 = arith.mulf %0, %0 : vector<16x32xf32>
    %cst_1 = arith.constant dense<0.000000e+00> : vector<16xf32>
    %4 = vector.multi_reduction <add>, %3, %cst_1 [1] : vector<16x32xf32> to vector<16xf32>
    %5 = vector.shape_cast %4 : vector<16xf32> to vector<16x1xf32>
    %cst_2 = arith.constant 3.125000e-02 : f32
    %6 = vector.broadcast %cst_2 : f32 to vector<16x1xf32>
    %7 = arith.mulf %2, %6 : vector<16x1xf32>
    %8 = arith.mulf %2, %7 : vector<16x1xf32>
    %9 = arith.subf %5, %8 : vector<16x1xf32>
    %cst_3 = arith.constant 3.100000e+01 : f32
    %10 = vector.broadcast %cst_3 : f32 to vector<16x1xf32>
    %11 = arith.divf %9, %10 : vector<16x1xf32>
    %cst_4 = arith.constant 0.000000e+00 : f32
    %12 = vector.broadcast %cst_4 : f32 to vector<16x1xf32>
    %13 = arith.maximumf %11, %12 : vector<16x1xf32>
    %14 = math.sqrt %13 : vector<16x1xf32>
    %cst_5 = arith.constant 9.99999997E-7 : f32
    %15 = vector.broadcast %cst_5 : f32 to vector<16x1xf32>
    %16 = arith.addf %14, %15 : vector<16x1xf32>
    %17 = tpu.reciprocal %16 {approx = true} : vector<16x1xf32> -> vector<16x1xf32>
    %18 = arith.mulf %16, %17 : vector<16x1xf32>
    %cst_6 = arith.constant 2.000000e+00 : f32
    %19 = vector.broadcast %cst_6 : f32 to vector<16x1xf32>
    %20 = arith.subf %19, %18 : vector<16x1xf32>
    %21 = arith.mulf %17, %20 : vector<16x1xf32>
    %c0_7 = arith.constant 0 : index
    %c0_8 = arith.constant 0 : index
    %22 = vector.load %arg2[%c0_7, %c0_8] : memref<1x32xf32, #tpu.memory_space<vmem>>, vector<1x32xf32>
    %c0_9 = arith.constant 0 : index
    %c0_10 = arith.constant 0 : index
    %23 = vector.load %arg3[%c0_9, %c0_10] : memref<1x32xf32, #tpu.memory_space<vmem>>, vector<1x32xf32>
    %24 = vector.broadcast %7 : vector<16x1xf32> to vector<16x32xf32>
    %25 = arith.subf %0, %24 : vector<16x32xf32>
    %26 = vector.broadcast %21 : vector<16x1xf32> to vector<16x32xf32>
    %27 = arith.mulf %25, %26 : vector<16x32xf32>
    %28 = vector.broadcast %22 : vector<1x32xf32> to vector<16x32xf32>
    %29 = arith.mulf %27, %28 : vector<16x32xf32>
    %30 = vector.broadcast %23 : vector<1x32xf32> to vector<16x32xf32>
    %31 = arith.addf %29, %30 : vector<16x32xf32>
    %c0_11 = arith.constant 0 : index
    %c0_12 = arith.constant 0 : index
    %32 = vector.load %arg4[%c0_11, %c0_12] : memref<16x32xf32, #tpu.memory_space<vmem>>, vector<16x32xf32>
    tpu.vector_store %arg4[%c0_11, %c0_12], %31 {strides = array<i32>} : memref<16x32xf32, #tpu.memory_space<vmem>>, vector<16x32xf32>,
    return
  }
  func.func @transform_0(%arg0: i32) -> (i32, i32) {
    %c0_i32 = arith.constant 0 : i32
    %c0_i32_0 = arith.constant 0 : i32
    return %arg0, %c0_i32 : i32, i32
  }
  func.func @transform_1(%arg0: i32) -> (i32, i32) {
    %c0_i32 = arith.constant 0 : i32
    %c0_i32_0 = arith.constant 0 : i32
    %c0_i32_1 = arith.constant 0 : i32
    return %c0_i32, %c0_i32_0 : i32, i32
  }
  func.func @transform_2(%arg0: i32) -> (i32, i32) {
    %c0_i32 = arith.constant 0 : i32
    %c0_i32_0 = arith.constant 0 : i32
    %c0_i32_1 = arith.constant 0 : i32
    return %c0_i32, %c0_i32_0 : i32, i32
  }
  func.func @transform_3(%arg0: i32) -> (i32, i32) {
    %c0_i32 = arith.constant 0 : i32
    %c0_i32_0 = arith.constant 0 : i32
    return %arg0, %c0_i32 : i32, i32
  }
}

</mosaic_0001>

<bundles_post_ra>
// kernel: tpu_custom_call.1
= control target key start
LH: loop header
LB: loop body
LE: loop exit
PB: predicated region body
PF: predicated region fallthrough
CT: control target
= control target key end

     0   :  { %8 = vsyncpa [#allocation3], 0  ;;  %s309_s0 = inlined_call_operand.hbm [shape: f32[16,32], index: 0, kind: input, shape index: {}]   ;;  %s310_s1 = inlined_call_operand.hbm [shape: f32[1,32], index: 1, kind: input, shape index: {}]   ;;  %s311_s2 = inlined_call_operand.vmem [shape: f32[1,32], index: 2, kind: input, shape index: {}]   ;;  %s312_s3 = inlined_call_operand.hbm [shape: f32[16,32], index: 3, kind: output, shape index: {}]  }
   0x1   :  { %9 = vsyncpa [#allocation6], 0 }
   0x2   :  { %10 = vsyncpa [#allocation4], 0  ;;  %s15_s14 = sshll.u32 %s309_s0, 4  ;;  %s247_s15 = smov [#allocation2]   ;;  %s16_s14 = int_to_ptr.hbm [resolvable:$true] %s15_s14 }
   0x3   :  { %s17_s16 = sshll.u32 %s247_s15, 4  ;;  %s29_s19 = sshll.u32 %s310_s1, 4  ;;  %s18_s16 = int_to_ptr.vmem [resolvable:$true] %s17_s16  ;;  %s30_s19 = int_to_ptr.hbm [resolvable:$true] %s29_s19 }
   0x4   :  { %s248_s20 = smov 128   ;;  %s249_s21 = smov 8  }
   0x5   :  { %23 = dma.hbm_to_vmem [thread:$0]  %s16_s14, 256, %s18_s16, [#allocation3], %s248_s20, %s248_s20, %s249_s21  }
   0x6   :  { %s250_s22 = smov [#allocation5]  }
   0x7   :  { %s31_s23 = sshll.u32 %s250_s22, 4  ;;  %s32_s23 = int_to_ptr.vmem [resolvable:$true] %s31_s23 }
   0x8   :  { %34 = dma.hbm_to_vmem [thread:$0]  %s30_s19, 16, %s32_s23, [#allocation6]  }
   0x9   :  { %241 = dma.done.wait [#allocation3], 256  }
   0xa   :  { %242 = vsyncadd [#allocation3], 4294967040 }
   0xb   :  { %243 = dma.done.wait [#allocation6], 16  }
   0xc   :  { %244 = vsyncadd [#allocation6], 4294967280  ;;  %vm47_vm0 = vcmask 261120   ;;  %v282_v0 = vld [vmem:[#allocation2] sm:$0xff]  ;;  %v289_v4 = vld [vmem:[#allocation2 + $0x8] sm:$0xff]  ;;  %v251_v8 = vmov 31.0  }
   0xd   :  { %v48_v1 = vsel %vm47_vm0, %v282_v0, 0.0  ;;  %v54_v2 = vmul.f32 %v282_v0, %v282_v0  ;;  %v55_v5 = vmul.f32 %v289_v4, %v289_v4  ;;  %v51_v6 = vsel %vm47_vm0, %v289_v4, 0.0  ;;  %v157_v56 = vld [vmem:[#allocation5] ss:$0 sm:$0xff]  ;;  %v158_v58 = vld [vmem:[%s311_s2] ss:$0 sm:$0xff] }
   0xe   :  { %49 = vadd.xlane.f32.xlu0 %v48_v1  ;;  %159 = vrcp.f32 %v251_v8  ;;  %s252_s24 = smov [#allocation7]   ;;  %s137_s28 = sshll.u32 %s312_s3, 4  ;;  %s138_s28 = int_to_ptr.hbm [resolvable:$true] %s137_s28 }
   0xf   :  { %v56_v3 = vsel %vm47_vm0, %v54_v2, 0.0  ;;  %v59_v7 = vsel %vm47_vm0, %v55_v5, 0.0  ;;  %s135_s25 = sshll.u32 %s252_s24, 4  ;;  %s136_s25 = int_to_ptr.vmem [resolvable:$true] %s135_s25 }
  0x10   :  { %57 = vadd.xlane.f32.xlu1 %v56_v3 }
  0x14   :  { %v160_v9 = vpop.eup %159 }
  0x15   :  { %v69_v10 = vmul.f32 31.0, %v160_v9  ;;  %vm73_vm1 = vweird.f32 %v160_v9 }
  0x16   :  { %52 = vadd.xlane.f32.xlu0 %v51_v6 }
  0x17   :  { %v70_v11 = vsub.f32 1.0, %v69_v10 }
  0x18   :  { %60 = vadd.xlane.f32.xlu1 %v59_v7 }
  0x19   :  { %v71_v12 = vmul.f32 %v160_v9, %v70_v11 }
  0x1b   :  { %v72_v14 = vadd.f32 %v160_v9, %v71_v12 }
  0x1d   :  { %v74_v18 = vsel %vm73_vm1, %v160_v9, %v72_v14 }
  0x81   :  { %v50_v13 = vpop.xlane.xlu0 %49 }
  0x82   :  { %v62_v15 = vmul.f32 0.03125, %v50_v13 }
  0x83   :  { %v58_v16 = vpop.xlane.xlu1 %57 }
  0x84   :  { %v64_v17 = vmul.f32 %v62_v15, %v50_v13  ;;  %v115_v54 = vsub.f32 %v282_v0, %v62_v15 }
  0x86   :  { %v66_v19 = vsub.f32 %v58_v16, %v64_v17 }
  0x88   :  { %v75_v20 = vmul.f32 %v74_v18, %v66_v19 }
  0x89   :  { %v53_v21 = vpop.xlane.xlu0 %52 }
  0x8a   :  { %v77_v22 = vmax.f32 %v75_v20, 0.0  ;;  %v63_v23 = vmul.f32 0.03125, %v53_v21 }
  0x8b   :  { %v61_v24 = vpop.xlane.xlu1 %60 }
  0x8c   :  { %161 = vrsqrt.f32 %v77_v22  ;;  %v65_v25 = vmul.f32 %v63_v23, %v53_v21  ;;  %vm86_vm2 = vcmp.eq.f32.partialorder %v77_v22, inf  ;;  %v89_v39 = vand.u32 2147483648, %v77_v22 }
  0x8d   :  { %vm88_vm3 = vcmp.eq.f32.partialorder %v77_v22, 0.0  ;;  %v116_v1 = vsub.f32 %v289_v4, %v63_v23 }
  0x8e   :  { %v67_v26 = vsub.f32 %v61_v24, %v65_v25 }
  0x90   :  { %v76_v27 = vmul.f32 %v74_v18, %v67_v26 }
  0x92   :  { %v162_v28 = vpop.eup %161  ;;  %v78_v29 = vmax.f32 %v76_v27, 0.0 }
  0x93   :  { %v80_v30 = vmul.f32 %v162_v28, %v77_v22 }
  0x94   :  { %163 = vrsqrt.f32 %v78_v29  ;;  %vm98_vm4 = vcmp.eq.f32.partialorder %v78_v29, inf  ;;  %v101_v47 = vand.u32 2147483648, %v78_v29  ;;  %vm100_vm5 = vcmp.eq.f32.partialorder %v78_v29, 0.0 }
  0x95   :  { %v81_v31 = vmul.f32 %v162_v28, %v80_v30 }
  0x97   :  { %v82_v32 = vmul.f32 0.5, %v81_v31 }
  0x99   :  { %v83_v33 = vsub.f32 1.5, %v82_v32 }
  0x9a   :  { %v164_v34 = vpop.eup %163 }
  0x9b   :  { %v84_v35 = vmul.f32 %v162_v28, %v83_v33  ;;  %v92_v36 = vmul.f32 %v164_v34, %v78_v29 }
  0x9d   :  { %v85_v37 = vmul.f32 %v84_v35, %v77_v22  ;;  %v93_v38 = vmul.f32 %v164_v34, %v92_v36 }
  0x9f   :  { %v94_v40 = vmul.f32 0.5, %v93_v38  ;;  %v87_v41 = vsel %vm86_vm2, %v77_v22, %v85_v37 }
  0xa0   :  { %v90_v42 = vsel %vm88_vm3, %v89_v39, %v87_v41 }
  0xa1   :  { %v95_v43 = vsub.f32 1.5, %v94_v40  ;;  %v103_v44 = vadd.f32 1e-06, %v90_v42 }
  0xa3   :  { %v96_v45 = vmul.f32 %v164_v34, %v95_v43  ;;  %165 = vrcp.f32 %v103_v44 }
  0xa5   :  { %v97_v46 = vmul.f32 %v96_v45, %v78_v29 }
  0xa7   :  { %v99_v48 = vsel %vm98_vm4, %v78_v29, %v97_v46 }
  0xa8   :  { %v102_v49 = vsel %vm100_vm5, %v101_v47, %v99_v48 }
  0xa9   :  { %v166_v50 = vpop.eup %165  ;;  %v104_v51 = vadd.f32 1e-06, %v102_v49 }
  0xaa   :  { %v107_v52 = vmul.f32 %v166_v50, %v103_v44 }
  0xab   :  { %167 = vrcp.f32 %v104_v51 }
  0xac   :  { %v109_v53 = vsub.f32 2.0, %v107_v52 }
  0xae   :  { %v111_v55 = vmul.f32 %v166_v50, %v109_v53 }
  0xb0   :  { %v117_v57 = vmul.f32 %v115_v54, %v111_v55 }
  0xb1   :  { %v168_v59 = vpop.eup %167 }
  0xb2   :  { %v108_v60 = vmul.f32 %v168_v59, %v104_v51  ;;  %v122_v61 = vmul.f32 %v157_v56, %v117_v57 }
  0xb4   :  { %v110_v62 = vsub.f32 2.0, %v108_v60  ;;  %v127_v63 = vadd.f32 %v158_v58, %v122_v61 }
  0xb6   :  { %v112_v2 = vmul.f32 %v168_v59, %v110_v62  ;;  %129 = vst.msk [vmem:[#allocation7] sm:$0xff] %vm47_vm0, %v127_v63 }
  0xb8   :  { %v118_v3 = vmul.f32 %v116_v1, %v112_v2 }
  0xba   :  { %v123_v0 = vmul.f32 %v157_v56, %v118_v3 }
  0xbc   :  { %v128_v5 = vadd.f32 %v158_v58, %v123_v0 }
  0xbe   :  { %130 = vst.msk [vmem:[#allocation7 + $0x8] sm:$0xff] %vm47_vm0, %v128_v5 }
  0xbf   :  { %143 = dma.vmem_to_hbm [thread:$0]  %s136_s25, 256, %s138_s28, [#allocation4], %s248_s20, %s248_s20, %s249_s21  }
  0xc0   :  { %245 = dma.done.wait [#allocation4], 256  }
  0xc1   :  { %246 = vsyncadd [#allocation4], 4294967040 }
  0xc2   :  { %148 = vsyncpa [#allocation3], 1 }
  0xc3   :  { %149 = vsyncpa [#allocation6], 1 }
  0xc4   :  { %150 = vsyncpa [#allocation4], 1 }

</bundles_post_ra>
